<compile_context>
chip_gen: v7x
topology: tpu7x:2x2x1
jax: 0.10.0
libtpu: 0.0.40
codegen_flags: <defaults>
</compile_context>

<pallas_src>
import jax
import jax.numpy as jnp
from jax.experimental import pallas as pl
from jax.experimental.pallas import tpu as pltpu


# Per-tile VMEM budget.  Pallas double-buffers input and output, so peak
# scoped-VMEM use is ~4x this (2 input bufs + 2 output bufs): 2 MiB/tile
# -> ~8 MiB, inside v5e's 16 MiB scoped default and comfortably inside the
# 32 MiB defaults on v6e/v7x (v7x physical VMEM is only 64 MiB).
_TILE_BUDGET_BYTES = 2 * 1024 * 1024


def _swap_last2_rank3_kernel(x_ref, o_ref):
    # x_ref: (tB, L, D) VMEM block; o_ref: (tB, D, L).
    # Batched minor-dim transpose -> XLU path, DMA-bound overall.
    o_ref[...] = jnp.swapaxes(x_ref[...], 1, 2)


def _swap_last2_rank2_kernel(x_ref, o_ref):
    # x_ref: (tL, tD) VMEM tile (batch dim squeezed); o_ref: (tD, tL).
    o_ref[...] = x_ref[...].T


def _round_down_multiple(n, m):
    return (n // m) * m


def _pick_lD_tiles(L, D, itemsize):
    """Pick (tL, tD) for the large-activation path (L*D*itemsize > budget).

    Prefer a full-extent minor dim (one contiguous HBM burst per block) and
    keep the other edge a multiple of 128 (lane-dense, unmasked stores).
    """
    budget = _TILE_BUDGET_BYTES
    if D <= 2048:
        # Full-extent D: each input block is a contiguous HBM read.
        tD = D
        max_rows = max(1, budget // (tD * itemsize))
        tL = L if L <= max_rows else max(128, _round_down_multiple(max_rows, 128))
        return tL, tD
    if L <= 2048:
        # Full-extent L: each output block is a contiguous HBM write.
        tL = L
        max_cols = max(1, budget // (tL * itemsize))
        tD = D if D <= max_cols else max(128, _round_down_multiple(max_cols, 128))
        return tL, tD
    # Both dims large: ~1024 x 512 (f32) keeps stores lane-dense while
    # amortizing the ~0.35 us per-grid-step overhead.
    tL = min(L, 1024)
    tD = min(D, max(128, _round_down_multiple(budget // (tL * itemsize), 128)))
    return tL, tD


def transpose_1_2(x):
    """Pallas equivalent of torch.Tensor.transpose(1, 2).contiguous():
    (B, L, D) -> (B, D, L) for rank-3 x."""
    assert x.ndim == 3, "kernel implements Transpose(1, 2) for rank-3 inputs"
    B, L, D = x.shape
    itemsize = jnp.dtype(x.dtype).itemsize
    out_shape = jax.ShapeDtypeStruct((B, D, L), x.dtype)
    # Pure data movement: read + write every element once.
    cost = pl.CostEstimate(
        flops=0, transcendentals=0, bytes_accessed=2 * B * L * D * itemsize
    )

    per_batch_bytes = L * D * itemsize
    if per_batch_bytes <= _TILE_BUDGET_BYTES:
        # Small-activation path (realistic MTS shapes): block over batch so
        # each grid step moves up to ~budget bytes; L and D blocks are
        # full-extent, which is always legal regardless of dtype packing.
        tB = int(max(1, min(B, _TILE_BUDGET_BYTES // max(per_batch_bytes, 1))))
        grid = (pl.cdiv(B, tB),)
        return pl.pallas_call(
            _swap_last2_rank3_kernel,
            out_shape=out_shape,
            grid_spec=pltpu.PrefetchScalarGridSpec(
                num_scalar_prefetch=0,
                grid=grid,
                in_specs=[pl.BlockSpec((tB, L, D), lambda b: (b, 0, 0))],
                out_specs=pl.BlockSpec((tB, D, L), lambda b: (b, 0, 0)),
            ),
            compiler_params=pltpu.CompilerParams(
                dimension_semantics=("parallel",),
            ),
            cost_estimate=cost,
        )(x)

    # Large-activation path: tile L and D; batch dim squeezed out of the Ref.
    tL, tD = _pick_lD_tiles(L, D, itemsize)
    nL = pl.cdiv(L, tL)
    nD = pl.cdiv(D, tD)
    return pl.pallas_call(
        _swap_last2_rank2_kernel,
        out_shape=out_shape,
        grid_spec=pltpu.PrefetchScalarGridSpec(
            num_scalar_prefetch=0,
            # grid axes: (batch, D-tile index j, L-tile index i);
            # consecutive steps walk the output's minor (L) block axis.
            grid=(B, nD, nL),
            in_specs=[
                # input (B, L, D): block (tL, tD) at block index (i, j).
                pl.BlockSpec((None, tL, tD), lambda b, j, i: (b, i, j)),
            ],
            # output (B, D, L): block (tD, tL) at block index (j, i);
            # tL is a multiple of 128 (or full L) -> lane-dense stores.
            out_specs=pl.BlockSpec((None, tD, tL), lambda b, j, i: (b, j, i)),
        ),
        compiler_params=pltpu.CompilerParams(
            # every output block written exactly once -> fully parallel grid
            dimension_semantics=("parallel", "parallel", "parallel"),
        ),
        cost_estimate=cost,
    )(x)


class Transpose:
    """Mirror of the PyTorch module's interface (only the dims used in MTS_UNMixers)."""

    def __init__(self, *dims, contiguous=False):
        self.dims = dims
        self.contiguous = contiguous  # Pallas output is always freshly materialized

    def __call__(self, x):
        # MTS_UNMixers / Model only ever swap the last two axes of rank-3
        # activations (permute(0, 2, 1) == transpose(1, 2)).
        if x.ndim == 3 and tuple(sorted(self.dims)) == (1, 2):
            return transpose_1_2(x)
        # Other dim pairs / ranks: plain JAX glue (semantically exact).
        return jnp.swapaxes(x, self.dims[0], self.dims[1])


if __name__ == "__main__":
    key = jax.random.PRNGKey(0)
    module = Transpose(1, 2, contiguous=True)

    # 1) Small shape consistent with MTS_UNMixers activations (batch, seq, channels):
    #    exercises the batch-blocked small-activation path.
    B, L, D = 2, 8, 32
    x_small = jax.random.normal(key, (B, L, D), dtype=jnp.float32)
    y_small = jax.block_until_ready(module(x_small))
    assert y_small.shape == (B, D, L)
    assert y_small.dtype == x_small.dtype
    assert jnp.allclose(y_small, jnp.swapaxes(x_small, 1, 2)), "small-shape mismatch"

    # 2) Mid shape: still <= 2 MiB per batch -> batch-blocked path with tB=1.
    B2, L2, D2 = 2, 640, 768
    x_mid = jax.random.normal(jax.random.PRNGKey(0), (B2, L2, D2), dtype=jnp.float32)
    y_mid = jax.block_until_ready(module(x_mid))
    assert y_mid.shape == (B2, D2, L2)
    assert jnp.allclose(y_mid, jnp.swapaxes(x_mid, 1, 2)), "mid-shape mismatch"

    # 3) Larger-than-budget shape: exercises the tiled path with a full-extent
    #    minor dim (tD = D) and a ragged edge along L (1056 = 768 + 288).
    B3, L3, D3 = 1, 1056, 640
    x_big = jax.random.normal(jax.random.PRNGKey(0), (B3, L3, D3), dtype=jnp.float32)
    y_big = jax.block_until_ready(module(x_big))
    assert y_big.shape == (B3, D3, L3)
    assert jnp.allclose(y_big, jnp.swapaxes(x_big, 1, 2)), "tiled-shape mismatch"

    print("KERNEL_OK")
</pallas_src>

<mosaic_0001>
module attributes {stable_mosaic.version = 11 : i64} {
  func.func @_swap_last2_rank3_kernel(%arg0: i32, %arg1: memref<2x8x32xf32, #tpu.memory_space<vmem>>, %arg2: memref<2x32x8xf32, #tpu.memory_space<vmem>>) attributes {dimension_semantics = [#tpu.dimension_semantics<parallel>], iteration_bounds = array<i64: 1>, scalar_prefetch = 0 : i64, scratch_operands = 0 : i64, tpu.core_type = #tpu.core_type<tc>, window_params = [{transform_indices = @transform_0, window_bounds = array<i64: 2, 8, 32>}, {transform_indices = @transform_1, window_bounds = array<i64: 2, 32, 8>}]} {
    %c0 = arith.constant 0 : index
    %c0_0 = arith.constant 0 : index
    %c0_1 = arith.constant 0 : index
    %0 = vector.load %arg1[%c0, %c0_0, %c0_1] : memref<2x8x32xf32, #tpu.memory_space<vmem>>, vector<2x8x32xf32>
    %1 = tpu.transpose %0, [0, 2, 1] : vector<2x8x32xf32> -> vector<2x32x8xf32>
    %c0_2 = arith.constant 0 : index
    %c0_3 = arith.constant 0 : index
    %c0_4 = arith.constant 0 : index
    %2 = vector.load %arg2[%c0_2, %c0_3, %c0_4] : memref<2x32x8xf32, #tpu.memory_space<vmem>>, vector<2x32x8xf32>
    tpu.vector_store %arg2[%c0_2, %c0_3, %c0_4], %1 {strides = array<i32>} : memref<2x32x8xf32, #tpu.memory_space<vmem>>, vector<2x32x8xf32>,
    return
  }
  func.func @transform_0(%arg0: i32) -> (i32, i32, i32) {
    %c0_i32 = arith.constant 0 : i32
    %c0_i32_0 = arith.constant 0 : i32
    %c0_i32_1 = arith.constant 0 : i32
    return %arg0, %c0_i32, %c0_i32_0 : i32, i32, i32
  }
  func.func @transform_1(%arg0: i32) -> (i32, i32, i32) {
    %c0_i32 = arith.constant 0 : i32
    %c0_i32_0 = arith.constant 0 : i32
    %c0_i32_1 = arith.constant 0 : i32
    return %arg0, %c0_i32, %c0_i32_0 : i32, i32, i32
  }
}

</mosaic_0001>

<bundles_post_ra>
// kernel: tpu_custom_call.1
= control target key start
LH: loop header
LB: loop body
LE: loop exit
PB: predicated region body
PF: predicated region fallthrough
CT: control target
= control target key end

     0   :  { %6 = vsyncpa [#allocation3], 0  ;;  %s130_s6 = smov [#allocation2]   ;;  %s187_s0 = inlined_call_operand.hbm [shape: f32[2,8,32], index: 0, kind: input, shape index: {}]   ;;  %s188_s1 = inlined_call_operand.vmem [shape: f32[2,32,8], index: 1, kind: output, shape index: {}]  }
   0x1   :  { %s12_s7 = sshll.u32 %s130_s6, 4  ;;  %s106_s10 = scalar_lea.hbm %s187_s0, 256  ;;  %s13_s7 = int_to_ptr.vmem [resolvable:$true] %s12_s7 }
   0x2   :  { %p107_p0 = scmp.ne.s32.totalorder %s187_s0, %s106_s10  ;;  %p110_p1 = scmp.lt.u32.totalorder %s106_s10, %s187_s0 }
   0x4   :  { %p112_p2 = pnand %p110_p1, %p107_p0 }
   0x6   :  { %115 = shalt.err (!%p112_p2)
}
   0x7   :  { %s116_s15 = scalar_lea.vmem %s13_s7, 256  ;;  %p121_p4 = scmp.lt.s32.totalorder %s13_s7, %s13_s7 }
   0x8   :  { %p117_p3 = scmp.ne.s32.totalorder %s13_s7, %s116_s15  ;;  %p122_p5 = scmp.lt.s32.totalorder %s116_s15, %s116_s15 }
   0xa   :  { %p123_p6 = por %p122_p5, %p121_p4 }
   0xc   :  { %p124_p7 = pnand %p123_p6, %p117_p3 }
   0xe   :  { %127 = shalt.err (!%p124_p7)
}
   0xf   :  { %s131_s16 = smov 128   ;;  %s132_s17 = smov 8  }
  0x10   :  { %18 = dma.hbm_to_vmem [thread:$0]  %s187_s0, 256, %s13_s7, [#allocation3], %s131_s16, %s131_s16, %s132_s17  }
  0x11   :  { %128 = dma.done.wait [#allocation3], 256  }
  0x12   :  { %129 = vsyncadd [#allocation3], 4294967040  ;;  %v22_v0 = vld [vmem:[#allocation2] sm:$0xff]  ;;  %v23_v1 = vld [vmem:[#allocation2 + $0x8] sm:$0xff]  ;;  %vm88_vm0 = vcmask 64512  }
  0x13   :  { %24 = vxpose.xlu0.b32.start.end [1/1] (short) (narrow) %v22_v0, 32 }
  0x20   :  { %56 = vxpose.xlu0.b32.start.end [1/1] (short) (narrow) %v23_v1, 32 }
  0x93   :  { %v40_v2 = vpop.trf.xlu0 }
  0x94   :  { %89 = vst.msk [vmem:[%s188_s1] sm:$0xff] %vm88_vm0, %v40_v2 }
  0x97   :  { %v41_v3 = vpop.trf.xlu0 }
  0x98   :  { %90 = vst.msk [vmem:[%s188_s1 + $0x8] sm:$0xff] %vm88_vm0, %v41_v3 }
  0x9b   :  { %v42_v4 = vpop.trf.xlu0 }
  0x9c   :  { %91 = vst.msk [vmem:[%s188_s1 + $0x10] sm:$0xff] %vm88_vm0, %v42_v4 }
  0x9f   :  { %v43_v5 = vpop.trf.xlu0 }
  0xa0   :  { %92 = vst.msk [vmem:[%s188_s1 + $0x18] sm:$0xff] %vm88_vm0, %v43_v5 }
  0xa3   :  { %v72_v6 = vpop.trf.xlu0 }
  0xa4   :  { %93 = vst.msk [vmem:[%s188_s1 + $0x20] sm:$0xff] %vm88_vm0, %v72_v6 }
  0xa7   :  { %v73_v7 = vpop.trf.xlu0 }
  0xa8   :  { %94 = vst.msk [vmem:[%s188_s1 + $0x28] sm:$0xff] %vm88_vm0, %v73_v7 }
  0xab   :  { %v74_v8 = vpop.trf.xlu0 }
  0xac   :  { %95 = vst.msk [vmem:[%s188_s1 + $0x30] sm:$0xff] %vm88_vm0, %v74_v8 }
  0xaf   :  { %v75_v9 = vpop.trf.xlu0 }
  0xb0   :  { %96 = vst.msk [vmem:[%s188_s1 + $0x38] sm:$0xff] %vm88_vm0, %v75_v9 }
  0xb1   :  { %101 = vsyncpa [#allocation3], 1 }

</bundles_post_ra>
